<compile_context>
chip_gen: v7x
topology: tpu7x:2x2x1
jax: 0.10.0
libtpu: 0.0.40
codegen_flags: <defaults>
</compile_context>

<pallas_src>
import jax
import jax.numpy as jnp
from jax.experimental import pallas as pl
from jax.experimental.pallas import tpu as pltpu

A_PAD = 128          # padded action dimension (one full lane width)
NEG_BIG = -1.0e30    # bias for padded logits -> exp underflows to exactly 0.0 in f32


def _round_up(x, m):
    return ((x + m - 1) // m) * m


def actor_kernel(x_ref, w1_ref, b1_ref, w2_ref, b2_ref,
                 w3_ref, b3_ref, w4_ref, b4_ref, o_ref):
    # fc1 + ReLU   (bf16 operands, f32 accumulate)
    x = x_ref[...].astype(jnp.bfloat16)
    h = jnp.dot(x, w1_ref[...], preferred_element_type=jnp.float32) + b1_ref[...]
    h = jnp.maximum(h, 0.0).astype(jnp.bfloat16)
    # fc2 + ReLU
    h = jnp.dot(h, w2_ref[...], preferred_element_type=jnp.float32) + b2_ref[...]
    h = jnp.maximum(h, 0.0).astype(jnp.bfloat16)
    # fc3 + ReLU
    h = jnp.dot(h, w3_ref[...], preferred_element_type=jnp.float32) + b3_ref[...]
    h = jnp.maximum(h, 0.0).astype(jnp.bfloat16)
    # out (padded to A_PAD) + softmax(dim=-1) in f32
    logits = jnp.dot(h, w4_ref[...], preferred_element_type=jnp.float32) + b4_ref[...]
    m = jnp.max(logits, axis=-1, keepdims=True)
    e = jnp.exp(logits - m)                       # padded cols -> exp(-1e30) == 0
    denom = jnp.sum(e, axis=-1, keepdims=True)
    # Exact divide: PPO log-prob / entropy consumers need rows summing to 1.
    o_ref[...] = (e / denom).astype(o_ref.dtype)


def _pick_tile_b(B):
    """Adaptive batch tile.

    * tiny/medium batch (<=256 rows): one tile of round_up(B, 8) rows -- the
      call is weight-DMA bound anyway, so don't pad to 128 needlessly.
    * large batch: 128-aligned tile capped at 512, chosen so there are always
      >= 2 tiles (both v7x TensorCores busy) and M >= 256 (full MXU M on
      v6e/v7x).
    """
    B8 = _round_up(max(int(B), 1), 8)
    if B8 <= 256:
        return B8
    return min(512, max(128, _round_up(B8 // 2, 128)))


def actor_forward(x, params, action_space, *, tile_b=None):
    """x: (B, state_space) f32.  params: bf16 weights / f32 biases (padded out layer)."""
    w1, b1, w2, b2, w3, b3, w4p, b4p = params
    B, S = x.shape
    a_pad = w4p.shape[1]

    if tile_b is None:
        tile_b = _pick_tile_b(B)
    n_tiles = pl.cdiv(B, tile_b)
    B_pad = n_tiles * tile_b
    if B_pad != B:
        x = jnp.pad(x, ((0, B_pad - B), (0, 0)))

    def resident(shape):
        # Constant block index + single buffer -> DMA'd once, VMEM-resident
        # across all batch tiles, no redundant double-buffer allocation.
        return pl.BlockSpec(shape, lambda i: (0, 0),
                            pipeline_mode=pl.Buffered(1))

    weight_bytes = sum(int(a.size) * a.dtype.itemsize for a in params)
    flops = 2 * B_pad * (S * 512 + 512 * 512 + 512 * 256 + 256 * a_pad)
    cost = pl.CostEstimate(
        flops=flops,
        transcendentals=B_pad * a_pad,
        bytes_accessed=weight_bytes + x.size * 4 + B_pad * a_pad * 4,
    )

    out = pl.pallas_call(
        actor_kernel,
        out_shape=jax.ShapeDtypeStruct((B_pad, a_pad), jnp.float32),
        grid_spec=pltpu.PrefetchScalarGridSpec(
            num_scalar_prefetch=0,
            grid=(n_tiles,),
            in_specs=[
                pl.BlockSpec((tile_b, S), lambda i: (i, 0)),
                resident(w1.shape), resident(b1.shape),
                resident(w2.shape), resident(b2.shape),
                resident(w3.shape), resident(b3.shape),
                resident(w4p.shape), resident(b4p.shape),
            ],
            out_specs=pl.BlockSpec((tile_b, a_pad), lambda i: (i, 0)),
        ),
        compiler_params=pltpu.CompilerParams(
            # Batch tiles independent -> both TensorCores on v7x (needs >= 2 tiles).
            dimension_semantics=("parallel",),
            # Real footprint < 4 MiB; a tight cap is portable across v5e/v6e/v7x.
            vmem_limit_bytes=16 * 1024 * 1024,
        ),
        cost_estimate=cost,
    )(x, w1, b1, w2, b2, w3, b3, w4p, b4p)

    return out[:B, :action_space]


def init_params(key, state_space, action_space):
    """nn.Linear-style U(-1/sqrt(fan_in), 1/sqrt(fan_in)) init.

    Weights are stored as (in, out) bf16; biases as (1, out) f32.  The final
    layer is padded to A_PAD output columns (zero weights, -1e30 bias) so the
    kernel's output store is one full lane-dense vreg write.  The padded bias
    MUST stay f32 (bf16/-fp16 would turn -1e30 into -inf / garbage).
    """
    dims = [(state_space, 512), (512, 512), (512, 256), (256, action_space)]
    params = []
    for li, (fan_in, fan_out) in enumerate(dims):
        key, kw, kb = jax.random.split(key, 3)
        bound = 1.0 / jnp.sqrt(jnp.float32(fan_in))
        w = jax.random.uniform(kw, (fan_in, fan_out), jnp.float32, -bound, bound)
        b = jax.random.uniform(kb, (1, fan_out), jnp.float32, -bound, bound)
        if li == len(dims) - 1:  # pad the output layer to A_PAD columns
            w = jnp.pad(w, ((0, 0), (0, A_PAD - fan_out)))
            b = jnp.pad(b, ((0, 0), (0, A_PAD - fan_out)),
                        constant_values=NEG_BIG)
        params.extend([w.astype(jnp.bfloat16), b.astype(jnp.float32)])
    return tuple(params)


def actor_forward_ref(x, params, action_space):
    """Pure-JAX f32 reference using the same (bf16-quantized, padded) params."""
    w1, b1, w2, b2, w3, b3, w4p, b4p = [p.astype(jnp.float32) for p in params]
    h = jnp.maximum(x @ w1 + b1, 0.0)
    h = jnp.maximum(h @ w2 + b2, 0.0)
    h = jnp.maximum(h @ w3 + b3, 0.0)
    logits = h @ w4p + b4p
    return jax.nn.softmax(logits, axis=-1)[:, :action_space]


if __name__ == "__main__":
    key = jax.random.PRNGKey(0)
    state_space = 16
    action_space = 6

    kx, kp, kx2 = jax.random.split(key, 3)
    params = init_params(kp, state_space, action_space)

    # --- small batch (single small tile, B padded only to a multiple of 8) ---
    batch = 8
    x = jax.random.normal(kx, (batch, state_space), jnp.float32)
    probs = jax.block_until_ready(actor_forward(x, params, action_space))
    assert probs.shape == (batch, action_space)
    assert bool(jnp.all(jnp.abs(jnp.sum(probs, axis=-1) - 1.0) < 1e-5))
    ref = actor_forward_ref(x, params, action_space)
    assert bool(jnp.all(jnp.abs(probs - ref) < 5e-2))

    # --- larger batch exercising the multi-tile (parallel grid) path ---
    batch2 = 384           # -> tile_b = 256, B_pad = 512, 2 tiles
    x2 = jax.random.normal(kx2, (batch2, state_space), jnp.float32)
    probs2 = jax.block_until_ready(actor_forward(x2, params, action_space))
    assert probs2.shape == (batch2, action_space)
    assert bool(jnp.all(jnp.abs(jnp.sum(probs2, axis=-1) - 1.0) < 1e-5))
    ref2 = actor_forward_ref(x2, params, action_space)
    assert bool(jnp.all(jnp.abs(probs2 - ref2) < 5e-2))

    print("KERNEL_OK")
</pallas_src>

<mosaic_0001>
module attributes {stable_mosaic.version = 11 : i64} {
  func.func @actor_kernel(%arg0: i32, %arg1: memref<8x16xf32, #tpu.memory_space<vmem>>, %arg2: memref<16x512xbf16, #tpu.memory_space<vmem>>, %arg3: memref<1x512xf32, #tpu.memory_space<vmem>>, %arg4: memref<512x512xbf16, #tpu.memory_space<vmem>>, %arg5: memref<1x512xf32, #tpu.memory_space<vmem>>, %arg6: memref<512x256xbf16, #tpu.memory_space<vmem>>, %arg7: memref<1x256xf32, #tpu.memory_space<vmem>>, %arg8: memref<256x128xbf16, #tpu.memory_space<vmem>>, %arg9: memref<1x128xf32, #tpu.memory_space<vmem>>, %arg10: memref<8x128xf32, #tpu.memory_space<vmem>>) attributes {dimension_semantics = [#tpu.dimension_semantics<parallel>], iteration_bounds = array<i64: 1>, scalar_prefetch = 0 : i64, scratch_operands = 0 : i64, tpu.core_type = #tpu.core_type<tc>, window_params = [{transform_indices = @transform_0, window_bounds = array<i64: 8, 16>}, {pipeline_mode = #tpu.pipeline_mode<synchronous>, transform_indices = @transform_1, window_bounds = array<i64: 16, 512>}, {pipeline_mode = #tpu.pipeline_mode<synchronous>, transform_indices = @transform_2, window_bounds = array<i64: 1, 512>}, {pipeline_mode = #tpu.pipeline_mode<synchronous>, transform_indices = @transform_3, window_bounds = array<i64: 512, 512>}, {pipeline_mode = #tpu.pipeline_mode<synchronous>, transform_indices = @transform_4, window_bounds = array<i64: 1, 512>}, {pipeline_mode = #tpu.pipeline_mode<synchronous>, transform_indices = @transform_5, window_bounds = array<i64: 512, 256>}, {pipeline_mode = #tpu.pipeline_mode<synchronous>, transform_indices = @transform_6, window_bounds = array<i64: 1, 256>}, {pipeline_mode = #tpu.pipeline_mode<synchronous>, transform_indices = @transform_7, window_bounds = array<i64: 256, 128>}, {pipeline_mode = #tpu.pipeline_mode<synchronous>, transform_indices = @transform_8, window_bounds = array<i64: 1, 128>}, {transform_indices = @transform_9, window_bounds = array<i64: 8, 128>}]} {
    %c0 = arith.constant 0 : index
    %c0_0 = arith.constant 0 : index
    %0 = vector.load %arg1[%c0, %c0_0] : memref<8x16xf32, #tpu.memory_space<vmem>>, vector<8x16xf32>
    %1 = arith.truncf %0 : vector<8x16xf32> to vector<8x16xbf16>
    %c0_1 = arith.constant 0 : index
    %c0_2 = arith.constant 0 : index
    %2 = vector.load %arg2[%c0_1, %c0_2] : memref<16x512xbf16, #tpu.memory_space<vmem>>, vector<16x512xbf16>
    %cst = arith.constant dense<0.000000e+00> : vector<8x512xf32>
    %3 = tpu.matmul %1, %2, %cst {dimension_numbers = #tpu.dot_dimension_numbers<[1], [0], [0], [1], [0, 0, 1, 1], [], []>} : vector<8x16xbf16>, vector<16x512xbf16>, vector<8x512xf32> -> vector<8x512xf32>
    %c0_3 = arith.constant 0 : index
    %c0_4 = arith.constant 0 : index
    %4 = vector.load %arg3[%c0_3, %c0_4] : memref<1x512xf32, #tpu.memory_space<vmem>>, vector<1x512xf32>
    %5 = vector.broadcast %4 : vector<1x512xf32> to vector<8x512xf32>
    %6 = arith.addf %3, %5 : vector<8x512xf32>
    %cst_5 = arith.constant 0.000000e+00 : f32
    %7 = vector.broadcast %cst_5 : f32 to vector<8x512xf32>
    %8 = arith.maximumf %6, %7 : vector<8x512xf32>
    %9 = arith.truncf %8 : vector<8x512xf32> to vector<8x512xbf16>
    %c0_6 = arith.constant 0 : index
    %c0_7 = arith.constant 0 : index
    %10 = vector.load %arg4[%c0_6, %c0_7] : memref<512x512xbf16, #tpu.memory_space<vmem>>, vector<512x512xbf16>
    %cst_8 = arith.constant dense<0.000000e+00> : vector<8x512xf32>
    %11 = tpu.matmul %9, %10, %cst_8 {dimension_numbers = #tpu.dot_dimension_numbers<[1], [0], [0], [1], [0, 0, 1, 1], [], []>} : vector<8x512xbf16>, vector<512x512xbf16>, vector<8x512xf32> -> vector<8x512xf32>
    %c0_9 = arith.constant 0 : index
    %c0_10 = arith.constant 0 : index
    %12 = vector.load %arg5[%c0_9, %c0_10] : memref<1x512xf32, #tpu.memory_space<vmem>>, vector<1x512xf32>
    %13 = vector.broadcast %12 : vector<1x512xf32> to vector<8x512xf32>
    %14 = arith.addf %11, %13 : vector<8x512xf32>
    %cst_11 = arith.constant 0.000000e+00 : f32
    %15 = vector.broadcast %cst_11 : f32 to vector<8x512xf32>
    %16 = arith.maximumf %14, %15 : vector<8x512xf32>
    %17 = arith.truncf %16 : vector<8x512xf32> to vector<8x512xbf16>
    %c0_12 = arith.constant 0 : index
    %c0_13 = arith.constant 0 : index
    %18 = vector.load %arg6[%c0_12, %c0_13] : memref<512x256xbf16, #tpu.memory_space<vmem>>, vector<512x256xbf16>
    %cst_14 = arith.constant dense<0.000000e+00> : vector<8x256xf32>
    %19 = tpu.matmul %17, %18, %cst_14 {dimension_numbers = #tpu.dot_dimension_numbers<[1], [0], [0], [1], [0, 0, 1, 1], [], []>} : vector<8x512xbf16>, vector<512x256xbf16>, vector<8x256xf32> -> vector<8x256xf32>
    %c0_15 = arith.constant 0 : index
    %c0_16 = arith.constant 0 : index
    %20 = vector.load %arg7[%c0_15, %c0_16] : memref<1x256xf32, #tpu.memory_space<vmem>>, vector<1x256xf32>
    %21 = vector.broadcast %20 : vector<1x256xf32> to vector<8x256xf32>
    %22 = arith.addf %19, %21 : vector<8x256xf32>
    %cst_17 = arith.constant 0.000000e+00 : f32
    %23 = vector.broadcast %cst_17 : f32 to vector<8x256xf32>
    %24 = arith.maximumf %22, %23 : vector<8x256xf32>
    %25 = arith.truncf %24 : vector<8x256xf32> to vector<8x256xbf16>
    %c0_18 = arith.constant 0 : index
    %c0_19 = arith.constant 0 : index
    %26 = vector.load %arg8[%c0_18, %c0_19] : memref<256x128xbf16, #tpu.memory_space<vmem>>, vector<256x128xbf16>
    %cst_20 = arith.constant dense<0.000000e+00> : vector<8x128xf32>
    %27 = tpu.matmul %25, %26, %cst_20 {dimension_numbers = #tpu.dot_dimension_numbers<[1], [0], [0], [1], [0, 0, 1, 1], [], []>} : vector<8x256xbf16>, vector<256x128xbf16>, vector<8x128xf32> -> vector<8x128xf32>
    %c0_21 = arith.constant 0 : index
    %c0_22 = arith.constant 0 : index
    %28 = vector.load %arg9[%c0_21, %c0_22] : memref<1x128xf32, #tpu.memory_space<vmem>>, vector<1x128xf32>
    %29 = vector.broadcast %28 : vector<1x128xf32> to vector<8x128xf32>
    %30 = arith.addf %27, %29 : vector<8x128xf32>
    %cst_23 = arith.constant dense<0xFF800000> : vector<8xf32>
    %31 = vector.multi_reduction <maximumf>, %30, %cst_23 [1] : vector<8x128xf32> to vector<8xf32>
    %32 = vector.shape_cast %31 : vector<8xf32> to vector<8x1xf32>
    %33 = vector.broadcast %32 : vector<8x1xf32> to vector<8x128xf32>
    %34 = arith.subf %30, %33 : vector<8x128xf32>
    %35 = math.exp %34 : vector<8x128xf32>
    %cst_24 = arith.constant dense<0.000000e+00> : vector<8xf32>
    %36 = vector.multi_reduction <add>, %35, %cst_24 [1] : vector<8x128xf32> to vector<8xf32>
    %37 = vector.shape_cast %36 : vector<8xf32> to vector<8x1xf32>
    %38 = vector.broadcast %37 : vector<8x1xf32> to vector<8x128xf32>
    %39 = arith.divf %35, %38 : vector<8x128xf32>
    %c0_25 = arith.constant 0 : index
    %c0_26 = arith.constant 0 : index
    %40 = vector.load %arg10[%c0_25, %c0_26] : memref<8x128xf32, #tpu.memory_space<vmem>>, vector<8x128xf32>
    tpu.vector_store %arg10[%c0_25, %c0_26], %39 {strides = array<i32>} : memref<8x128xf32, #tpu.memory_space<vmem>>, vector<8x128xf32>,
    return
  }
  func.func @transform_0(%arg0: i32) -> (i32, i32) {
    %c0_i32 = arith.constant 0 : i32
    %c0_i32_0 = arith.constant 0 : i32
    return %arg0, %c0_i32 : i32, i32
  }
  func.func @transform_1(%arg0: i32) -> (i32, i32) {
    %c0_i32 = arith.constant 0 : i32
    %c0_i32_0 = arith.constant 0 : i32
    %c0_i32_1 = arith.constant 0 : i32
    return %c0_i32, %c0_i32_0 : i32, i32
  }
  func.func @transform_2(%arg0: i32) -> (i32, i32) {
    %c0_i32 = arith.constant 0 : i32
    %c0_i32_0 = arith.constant 0 : i32
    %c0_i32_1 = arith.constant 0 : i32
    return %c0_i32, %c0_i32_0 : i32, i32
  }
  func.func @transform_3(%arg0: i32) -> (i32, i32) {
    %c0_i32 = arith.constant 0 : i32
    %c0_i32_0 = arith.constant 0 : i32
    %c0_i32_1 = arith.constant 0 : i32
    return %c0_i32, %c0_i32_0 : i32, i32
  }
  func.func @transform_4(%arg0: i32) -> (i32, i32) {
    %c0_i32 = arith.constant 0 : i32
    %c0_i32_0 = arith.constant 0 : i32
    %c0_i32_1 = arith.constant 0 : i32
    return %c0_i32, %c0_i32_0 : i32, i32
  }
  func.func @transform_5(%arg0: i32) -> (i32, i32) {
    %c0_i32 = arith.constant 0 : i32
    %c0_i32_0 = arith.constant 0 : i32
    %c0_i32_1 = arith.constant 0 : i32
    return %c0_i32, %c0_i32_0 : i32, i32
  }
  func.func @transform_6(%arg0: i32) -> (i32, i32) {
    %c0_i32 = arith.constant 0 : i32
    %c0_i32_0 = arith.constant 0 : i32
    %c0_i32_1 = arith.constant 0 : i32
    return %c0_i32, %c0_i32_0 : i32, i32
  }
  func.func @transform_7(%arg0: i32) -> (i32, i32) {
    %c0_i32 = arith.constant 0 : i32
    %c0_i32_0 = arith.constant 0 : i32
    %c0_i32_1 = arith.constant 0 : i32
    return %c0_i32, %c0_i32_0 : i32, i32
  }
  func.func @transform_8(%arg0: i32) -> (i32, i32) {
    %c0_i32 = arith.constant 0 : i32
    %c0_i32_0 = arith.constant 0 : i32
    %c0_i32_1 = arith.constant 0 : i32
    return %c0_i32, %c0_i32_0 : i32, i32
  }
  func.func @transform_9(%arg0: i32) -> (i32, i32) {
    %c0_i32 = arith.constant 0 : i32
    %c0_i32_0 = arith.constant 0 : i32
    return %arg0, %c0_i32 : i32, i32
  }
}

</mosaic_0001>

<bundles_post_ra>
// kernel: tpu_custom_call.1
= control target key start
LH: loop header
LB: loop body
LE: loop exit
PB: predicated region body
PF: predicated region fallthrough
CT: control target
= control target key end

     0   :  { %14 = vsyncpa [#allocation3], 0  ;;  %s2812_s0 = inlined_call_operand.hbm [shape: f32[8,16], index: 0, kind: input, shape index: {}]   ;;  %s2813_s1 = inlined_call_operand.hbm [shape: bf16[16,512], index: 1, kind: input, shape index: {}]   ;;  %s2814_s2 = inlined_call_operand.vmem [shape: f32[1,512], index: 2, kind: input, shape index: {}]   ;;  %s2815_s3 = inlined_call_operand.hbm [shape: bf16[512,512], index: 3, kind: input, shape index: {}]   ;;  %s2816_s4 = inlined_call_operand.vmem [shape: f32[1,512], index: 4, kind: input, shape index: {}]   ;;  %s2817_s5 = inlined_call_operand.hbm [shape: bf16[512,256], index: 5, kind: input, shape index: {}]   ;;  %s2818_s6 = inlined_call_operand.vmem [shape: f32[1,256], index: 6, kind: input, shape index: {}]   ;;  %s2819_s7 = inlined_call_operand.hbm [shape: bf16[256,128], index: 7, kind: input, shape index: {}]   ;;  %s2820_s8 = inlined_call_operand.vmem [shape: f32[1,128], index: 8, kind: input, shape index: {}]   ;;  %s2821_s9 = inlined_call_operand.hbm [shape: f32[8,128], index: 9, kind: output, shape index: {}]  }
   0x1   :  { %15 = vsyncpa [#allocation6], 0 }
   0x2   :  { %16 = vsyncpa [#allocation9], 0 }
   0x3   :  { %17 = vsyncpa [#allocation4], 0  ;;  %s2608_s30 = smov [#allocation5]   ;;  %s2468_s13 = scalar_lea.hbm %s2813_s1, 512 }
   0x4   :  { %s33_s10 = sshll.u32 %s2608_s30, 4  ;;  %p2469_p0 = scmp.ne.s32.totalorder %s2813_s1, %s2468_s13  ;;  %s34_s10 = int_to_ptr.vmem [resolvable:$true] %s33_s10 }
   0x5   :  { %p2472_p1 = scmp.lt.u32.totalorder %s2468_s13, %s2813_s1 }
   0x7   :  { %p2474_p2 = pnand %p2472_p1, %p2469_p0 }
   0x9   :  { %2477 = shalt.err (!%p2474_p2)
}
   0xa   :  { %s2478_s18 = scalar_lea.vmem %s34_s10, 512  ;;  %p2483_p4 = scmp.lt.s32.totalorder %s34_s10, %s34_s10 }
   0xb   :  { %p2479_p3 = scmp.ne.s32.totalorder %s34_s10, %s2478_s18  ;;  %p2484_p5 = scmp.lt.s32.totalorder %s2478_s18, %s2478_s18 }
   0xd   :  { %p2485_p6 = por %p2484_p5, %p2483_p4 }
   0xf   :  { %p2486_p7 = pnand %p2485_p6, %p2479_p3 }
  0x11   :  { %2489 = shalt.err (!%p2486_p7)
}
  0x12   :  { %s2609_s19 = smov 256   ;;  %s2610_s20 = smov 16  }
  0x13   :  { %39 = dma.hbm_to_vmem [thread:$0]  %s2813_s1, 512, %s34_s10, [#allocation6], %s2609_s19, %s2609_s19, %s2610_s20  }
  0x14   :  { %s2611_s23 = smov [#allocation8]   ;;  %s2490_s27 = scalar_lea.hbm %s2817_s5, 8192 }
  0x15   :  { %s61_s24 = sshll.u32 %s2611_s23, 4  ;;  %p2491_p8 = scmp.ne.s32.totalorder %s2817_s5, %s2490_s27  ;;  %s62_s24 = int_to_ptr.vmem [resolvable:$true] %s61_s24 }
  0x16   :  { %p2494_p9 = scmp.lt.u32.totalorder %s2490_s27, %s2817_s5 }
  0x18   :  { %p2496_p10 = pnand %p2494_p9, %p2491_p8 }
  0x1a   :  { %2499 = shalt.err (!%p2496_p10)
}
  0x1b   :  { %s2500_s12 = scalar_lea.vmem %s62_s24, 8192  ;;  %p2505_p12 = scmp.lt.s32.totalorder %s62_s24, %s62_s24 }
  0x1c   :  { %p2501_p11 = scmp.ne.s32.totalorder %s62_s24, %s2500_s12  ;;  %p2506_p13 = scmp.lt.s32.totalorder %s2500_s12, %s2500_s12 }
  0x1e   :  { %p2507_p0 = por %p2506_p13, %p2505_p12 }
  0x20   :  { %p2508_p1 = pnand %p2507_p0, %p2501_p11 }
  0x22   :  { %2511 = shalt.err (!%p2508_p1)
}
  0x23   :  { %s2612_s1 = smov 128   ;;  %s2613_s10 = smov 8  }
  0x24   :  { %67 = dma.hbm_to_vmem [thread:$0]  %s2817_s5, 8192, %s62_s24, [#allocation9], %s2612_s1, %s2612_s1, %s2613_s10  }
  0x25   :  { %s2614_s15 = smov [#allocation2]   ;;  %s2615_s17 = smov [#allocation7]  }
  0x26   :  { %s24_s16 = sshll.u32 %s2614_s15, 4  ;;  %s47_s18 = sshll.u32 %s2615_s17, 4  ;;  %s25_s16 = int_to_ptr.vmem [resolvable:$true] %s24_s16  ;;  %s2698_s18 = int_to_ptr.vmem [resolvable:$true] %s47_s18 }
  0x27   :  { %s2512_s23 = scalar_lea.hbm %s2812_s0, 128 }
  0x28   :  { %p2513_p2 = scmp.ne.s32.totalorder %s2812_s0, %s2512_s23  ;;  %p2516_p3 = scmp.lt.u32.totalorder %s2512_s23, %s2812_s0 }
  0x2a   :  { %p2518_p4 = pnand %p2516_p3, %p2513_p2 }
  0x2c   :  { %2521 = shalt.err (!%p2518_p4)
}
  0x2d   :  { %s2522_s5 = scalar_lea.vmem %s25_s16, 128  ;;  %p2527_p6 = scmp.lt.s32.totalorder %s25_s16, %s25_s16 }
  0x2e   :  { %p2523_p5 = scmp.ne.s32.totalorder %s25_s16, %s2522_s5  ;;  %p2528_p7 = scmp.lt.s32.totalorder %s2522_s5, %s2522_s5 }
  0x30   :  { %p2529_p8 = por %p2528_p7, %p2527_p6 }
  0x32   :  { %p2530_p9 = pnand %p2529_p8, %p2523_p5 }
  0x34   :  { %2533 = shalt.err (!%p2530_p9)
}
  0x35   :  { %27 = dma.hbm_to_vmem [thread:$0]  %s2812_s0, 128, %s25_s16, [#allocation3]  }
  0x36   :  { %s2534_s12 = scalar_lea.hbm %s2815_s3, 16384 }
  0x37   :  { %p2535_p10 = scmp.ne.s32.totalorder %s2815_s3, %s2534_s12  ;;  %p2538_p11 = scmp.lt.u32.totalorder %s2534_s12, %s2815_s3 }
  0x39   :  { %p2540_p12 = pnand %p2538_p11, %p2535_p10 }
  0x3b   :  { %2543 = shalt.err (!%p2540_p12)
}
  0x3c   :  { %s2544_s15 = scalar_lea.vmem %s2698_s18, 16384  ;;  %p2549_p0 = scmp.lt.s32.totalorder %s2698_s18, %s2698_s18 }
  0x3d   :  { %p2545_p13 = scmp.ne.s32.totalorder %s2698_s18, %s2544_s15  ;;  %p2550_p1 = scmp.lt.s32.totalorder %s2544_s15, %s2544_s15 }
  0x3f   :  { %p2551_p2 = por %p2550_p1, %p2549_p0 }
  0x41   :  { %p2552_p3 = pnand %p2551_p2, %p2545_p13 }
  0x43   :  { %2555 = shalt.err (!%p2552_p3)
}
  0x44   :  { %53 = dma.hbm_to_vmem [thread:$0]  %s2815_s3, 16384, %s2698_s18, [#allocation6], %s2609_s19, %s2609_s19, %s2610_s20  }
  0x45   :  { %s2616_s17 = smov [#allocation10]   ;;  %s2556_s25 = scalar_lea.hbm %s2819_s7, 2048 }
  0x46   :  { %s75_s21 = sshll.u32 %s2616_s17, 4  ;;  %p2557_p4 = scmp.ne.s32.totalorder %s2819_s7, %s2556_s25  ;;  %s76_s21 = int_to_ptr.vmem [resolvable:$true] %s75_s21 }
  0x47   :  { %p2560_p5 = scmp.lt.u32.totalorder %s2556_s25, %s2819_s7 }
  0x49   :  { %p2562_p6 = pnand %p2560_p5, %p2557_p4 }
  0x4b   :  { %2565 = shalt.err (!%p2562_p6)
}
  0x4c   :  { %s2566_s24 = scalar_lea.vmem %s76_s21, 2048  ;;  %p2571_p8 = scmp.lt.s32.totalorder %s76_s21, %s76_s21 }
  0x4d   :  { %p2567_p7 = scmp.ne.s32.totalorder %s76_s21, %s2566_s24  ;;  %p2572_p9 = scmp.lt.s32.totalorder %s2566_s24, %s2566_s24 }
  0x4f   :  { %p2573_p10 = por %p2572_p9, %p2571_p8 }
  0x51   :  { %p2574_p11 = pnand %p2573_p10, %p2567_p7 }
  0x53   :  { %2577 = shalt.err (!%p2574_p11)
}
  0x54   :  { %s2617_s3 = smov 64   ;;  %s2618_s19 = smov 4  }
  0x55   :  { %81 = dma.hbm_to_vmem [thread:$0]  %s2819_s7, 2048, %s76_s21, [#allocation9], %s2617_s3, %s2617_s3, %s2618_s19  }
  0x56   :  { %2600 = dma.done.wait [#allocation3], 128  }
  0x57   :  { %2601 = vsyncadd [#allocation3], 4294967168 }
  0x58   :  { %2602 = dma.done.wait [#allocation6], 16896  }
  0x59   :  { %2603 = vsyncadd [#allocation6], 4294950400 }
  0x5a   :  { %2604 = dma.done.wait [#allocation9], 10240  }
  0x5b   :  { %2605 = vsyncadd [#allocation9], 4294957056  ;;  %v2619_v0 = vmov 0   ;;  %v2154_v1 = vld [vmem:[#allocation5 + $0x4] ss:$16 sps:$4 sm:$0xff]   ;;  %v100_v3 = vld [vmem:[#allocation2] sm:$0xff] }
  0x5c   :  { %184 = vmatprep.mubr.bf16.mxu0 %v2619_v0  ;;  %v2156_v2 = vld [vmem:[#allocation5] ss:$16 sps:$4 sm:$0xff]   ;;  %152 = vmatprep.subr.bf16.mxu0 %v2154_v1  ;;  %v101_v4 = vpack.c.bf16 %v100_v3, %v100_v3  ;;  %v2157_v5 = vld [vmem:[#allocation5 + $0x8] ss:$16 sps:$4 sm:$0xff]   ;;  %v2159_v6 = vld [vmem:[#allocation5 + $0xc] ss:$16 sps:$4 sm:$0xff]  }
  0x5d   :  { %153 = vmatpush1.bf16.msra.mxu0 %v2156_v2  ;;  %vm148_vm0 = vcmask 130048   ;;  %v2160_v7 = vld [vmem:[#allocation7 + $0x4] ss:$16 sps:$4 sm:$0xff]   ;;  %v2162_v8 = vld [vmem:[#allocation7] ss:$16 sps:$4 sm:$0xff]   ;;  %s2620_s1 = smov [#allocation11]  }
  0x5e   :  { %193 = vmatprep.subr.bf16.mxu0 %v2159_v6  ;;  %1032 = vmatprep.subr.bf16.mxu1 %v2160_v7  ;;  %v2163_v9 = vld [vmem:[#allocation7 + $0x24] ss:$16 sps:$4 sm:$0xff]   ;;  %v2165_v10 = vld [vmem:[#allocation7 + $0x20] ss:$16 sps:$4 sm:$0xff]   ;;  %v2252_v3 = vld [vmem:[#allocation7 + $0xc] ss:$16 sps:$4 sm:$0xff]  }
  0x5f   :  { %1033 = vmatpush1.bf16.msra.mxu1 %v2162_v8  ;;  %v2166_v11 = vld [vmem:[#allocation7 + $0x44] ss:$16 sps:$4 sm:$0xff]   ;;  %v2168_v13 = vld [vmem:[#allocation7 + $0x40] ss:$16 sps:$4 sm:$0xff]   ;;  %v108_v8 = vlaneseq  ;;  %s1877_s10 = sshll.u32 %s2620_s1, 4  ;;  %s1878_s10 = int_to_ptr.vmem [resolvable:$true] %s1877_s10 }
  0x60   :  { %1892 = vmatmul.mubr.msk.bf16.vlgmr.msra.gmra.mrb[0].mxu0 %vm148_vm0, %v101_v4  ;;  %1034 = vmatprep.subr.bf16.mxu1 %v2163_v9  ;;  %v2171_v12 = vld [vmem:[#allocation7 + $0x204] ss:$16 sps:$4 sm:$0xff]   ;;  %v2169_v14 = vld [vmem:[#allocation7 + $0x200] ss:$16 sps:$4 sm:$0xff]   ;;  %p2583_p13 = scmp.lt.s32.totalorder %s1878_s10, %s1878_s10 }
  0x61   :  { %194 = vmatpush1.bf16.msra.mxu0 %v2157_v5  ;;  %225 = vmatprep.mubr.bf16.mxu0 %v2619_v0  ;;  %v2172_v15 = vld [vmem:[#allocation7 + $0x64] ss:$16 sps:$4 sm:$0xff]   ;;  %v2174_v17 = vld [vmem:[#allocation7 + $0x60] ss:$16 sps:$4 sm:$0xff]   ;;  %v2746_v9 = vshrl.u32 %v108_v8, 7 }
  0x62   :  { %1073 = vmatprep.subr.bf16.mxu0 %v2171_v12  ;;  %v2177_v16 = vld [vmem:[#allocation7 + $0x224] ss:$16 sps:$4 sm:$0xff]   ;;  %v2175_v18 = vld [vmem:[#allocation7 + $0x220] ss:$16 sps:$4 sm:$0xff]   ;;  %v2283_v8 = vld [vmem:[#allocation7 + $0x128] ss:$16 sps:$4 sm:$0xff]  }
  0x63   :  { %1035 = vmatpush1.bf16.msra.mxu1 %v2165_v10  ;;  %v2178_v19 = vld [vmem:[#allocation7 + $0x84] ss:$16 sps:$4 sm:$0xff]   ;;  %v2180_v21 = vld [vmem:[#allocation7 + $0x80] ss:$16 sps:$4 sm:$0xff]   ;;  %v2749_v10 = vsub.s32 0, %v2746_v9  ;;  %v2755_v12 = vsub.s32 1, %v2746_v9 }
  0x64   :  { %1036 = vmatprep.subr.bf16.mxu1 %v2166_v11  ;;  %v2183_v20 = vld [vmem:[#allocation7 + $0x244] ss:$16 sps:$4 sm:$0xff]   ;;  %v2181_v22 = vld [vmem:[#allocation7 + $0x240] ss:$16 sps:$4 sm:$0xff]   ;;  %v106_v11 = vld [vmem:[%s2814_s2] sm:$0xf] }
  0x65   :  { %v2184_v23 = vld [vmem:[#allocation7 + $0xa4] ss:$16 sps:$4 sm:$0xff]   ;;  %v2186_v25 = vld [vmem:[#allocation7 + $0xa0] ss:$16 sps:$4 sm:$0xff]  }
  0x66   :  { %v2189_v24 = vld [vmem:[#allocation7 + $0x264] ss:$16 sps:$4 sm:$0xff]   ;;  %v2187_v26 = vld [vmem:[#allocation7 + $0x260] ss:$16 sps:$4 sm:$0xff]  }
  0x67   :  { %1037 = vmatpush1.bf16.msra.mxu1 %v2168_v13  ;;  %v2190_v27 = vld [vmem:[#allocation7 + $0xc4] ss:$16 sps:$4 sm:$0xff]   ;;  %v2192_v29 = vld [vmem:[#allocation7 + $0xc0] ss:$16 sps:$4 sm:$0xff]   ;;  %v111_v13 = vrot.slane %v106_v11, %v2749_v10 }
  0x68   :  { %1893 = vmatmul.mubr.msk.bf16.vlgmr.msra.gmra.mrb[4].mxu0 %vm148_vm0, %v101_v4  ;;  %1038 = vmatprep.subr.bf16.mxu1 %v2172_v15  ;;  %v2195_v28 = vld [vmem:[#allocation7 + $0x284] ss:$16 sps:$4 sm:$0xff]   ;;  %v2193_v30 = vld [vmem:[#allocation7 + $0x280] ss:$16 sps:$4 sm:$0xff]  }
  0x69   :  { %1074 = vmatpush1.bf16.msra.mxu0 %v2169_v14  ;;  %v2196_v31 = vld [vmem:[#allocation7 + $0xe4] ss:$16 sps:$4 sm:$0xff]   ;;  %v2198_v33 = vld [vmem:[#allocation7 + $0xe0] ss:$16 sps:$4 sm:$0xff]   ;;  %v115_v14 = vrot.slane %v106_v11, %v2755_v12 }
  0x6a   :  { %1075 = vmatprep.subr.bf16.mxu0 %v2177_v16  ;;  %v2201_v32 = vld [vmem:[#allocation7 + $0x2a4] ss:$16 sps:$4 sm:$0xff]   ;;  %v2199_v34 = vld [vmem:[#allocation7 + $0x2a0] ss:$16 sps:$4 sm:$0xff]  }
  0x6b   :  { %1039 = vmatpush1.bf16.msra.mxu1 %v2174_v17  ;;  %v2202_v35 = vld [vmem:[#allocation7 + $0x104] ss:$16 sps:$4 sm:$0xff]   ;;  %v2204_v37 = vld [vmem:[#allocation7 + $0x100] ss:$16 sps:$4 sm:$0xff]  }
  0x6c   :  { %1040 = vmatprep.subr.bf16.mxu1 %v2178_v19  ;;  %v2207_v36 = vld [vmem:[#allocation7 + $0x2c4] ss:$16 sps:$4 sm:$0xff]   ;;  %v2205_v38 = vld [vmem:[#allocation7 + $0x2c0] ss:$16 sps:$4 sm:$0xff]  }
  0x6d   :  { %1076 = vmatpush1.bf16.msra.mxu0 %v2175_v18  ;;  %v2208_v39 = vld [vmem:[#allocation7 + $0x124] ss:$16 sps:$4 sm:$0xff]   ;;  %v2210_v41 = vld [vmem:[#allocation7 + $0x120] ss:$16 sps:$4 sm:$0xff]   ;;  %v118_v18 = vsub.s32 2, %v2746_v9 }
  0x6e   :  { %1077 = vmatprep.subr.bf16.mxu0 %v2183_v20  ;;  %v2213_v40 = vld [vmem:[#allocation7 + $0x2e4] ss:$16 sps:$4 sm:$0xff]   ;;  %v2211_v42 = vld [vmem:[#allocation7 + $0x2e0] ss:$16 sps:$4 sm:$0xff]  }
  0x6f   :  { %1041 = vmatpush1.bf16.msra.mxu1 %v2180_v21  ;;  %v2214_v43 = vld [vmem:[#allocation7 + $0x144] ss:$16 sps:$4 sm:$0xff]   ;;  %v2216_v45 = vld [vmem:[#allocation7 + $0x140] ss:$16 sps:$4 sm:$0xff]   ;;  %v122_v21 = vsub.s32 3, %v2746_v9  ;;  %v2463_v9 = vld [vmem:[#allocation10 + $0x38] sm:$0xff]  }
  0x70   :  { %1042 = vmatprep.subr.bf16.mxu1 %v2184_v23  ;;  %v2219_v44 = vld [vmem:[#allocation7 + $0x304] ss:$16 sps:$4 sm:$0xff]   ;;  %v2217_v46 = vld [vmem:[#allocation7 + $0x300] ss:$16 sps:$4 sm:$0xff]  }
  0x71   :  { %1078 = vmatpush1.bf16.msra.mxu0 %v2181_v22  ;;  %v2220_v47 = vld [vmem:[#allocation7 + $0x164] ss:$16 sps:$4 sm:$0xff]   ;;  %v2222_v49 = vld [vmem:[#allocation7 + $0x160] ss:$16 sps:$4 sm:$0xff]  }
  0x72   :  { %1079 = vmatprep.subr.bf16.mxu0 %v2189_v24  ;;  %v2225_v48 = vld [vmem:[#allocation7 + $0x324] ss:$16 sps:$4 sm:$0xff]   ;;  %v2223_v50 = vld [vmem:[#allocation7 + $0x320] ss:$16 sps:$4 sm:$0xff]  }
  0x73   :  { %1043 = vmatpush1.bf16.msra.mxu1 %v2186_v25  ;;  %v2226_v51 = vld [vmem:[#allocation7 + $0x184] ss:$16 sps:$4 sm:$0xff]   ;;  %v2228_v53 = vld [vmem:[#allocation7 + $0x180] ss:$16 sps:$4 sm:$0xff]   ;;  %v119_v25 = vrot.slane %v106_v11, %v118_v18 }
  0x74   :  { %1044 = vmatprep.subr.bf16.mxu1 %v2190_v27  ;;  %v2231_v52 = vld [vmem:[#allocation7 + $0x344] ss:$16 sps:$4 sm:$0xff]   ;;  %v2229_v54 = vld [vmem:[#allocation7 + $0x340] ss:$16 sps:$4 sm:$0xff]   ;;  %v2250_v27 = vld [vmem:[#allocation7 + $0x8] ss:$16 sps:$4 sm:$0xff]  }
  0x75   :  { %1080 = vmatpush1.bf16.msra.mxu0 %v2187_v26  ;;  %v2232_v55 = vld [vmem:[#allocation7 + $0x1a4] ss:$16 sps:$4 sm:$0xff]   ;;  %v2234_v57 = vld [vmem:[#allocation7 + $0x1a0] ss:$16 sps:$4 sm:$0xff]  }
  0x76   :  { %1081 = vmatprep.subr.bf16.mxu0 %v2195_v28  ;;  %v2237_v56 = vld [vmem:[#allocation7 + $0x364] ss:$16 sps:$4 sm:$0xff]   ;;  %v2235_v58 = vld [vmem:[#allocation7 + $0x360] ss:$16 sps:$4 sm:$0xff]   ;;  %v123_v28 = vrot.slane %v106_v11, %v122_v21 }
  0x77   :  { %1045 = vmatpush1.bf16.msra.mxu1 %v2192_v29  ;;  %v2238_v59 = vld [vmem:[#allocation7 + $0x1c4] ss:$16 sps:$4 sm:$0xff]   ;;  %v2240_v60 = vld [vmem:[#allocation7 + $0x1c0] ss:$16 sps:$4 sm:$0xff]  }
  0x78   :  { %1046 = vmatprep.subr.bf16.mxu1 %v2196_v31  ;;  %v2243_v61 = vld [vmem:[#allocation7 + $0x384] ss:$16 sps:$4 sm:$0xff]   ;;  %v2241_v62 = vld [vmem:[#allocation7 + $0x380] ss:$16 sps:$4 sm:$0xff]  }
  0x79   :  { %1082 = vmatpush1.bf16.msra.mxu0 %v2193_v30  ;;  %v2244_v63 = vld [vmem:[#allocation7 + $0x1e4] ss:$16 sps:$4 sm:$0xff]   ;;  %v2246_v0 = vld [vmem:[#allocation7 + $0x1e0] ss:$16 sps:$4 sm:$0xff]   ;;  %v2258_v30 = vld [vmem:[#allocation7 + $0x2c] ss:$16 sps:$4 sm:$0xff]  }
  0x7a   :  { %1083 = vmatprep.subr.bf16.mxu0 %v2201_v32  ;;  %v2249_v1 = vld [vmem:[#allocation7 + $0x3a4] ss:$16 sps:$4 sm:$0xff]   ;;  %v2247_v2 = vld [vmem:[#allocation7 + $0x3a0] ss:$16 sps:$4 sm:$0xff]  }
  0x7b   :  { %1047 = vmatpush1.bf16.msra.mxu1 %v2198_v33  ;;  %v2255_v4 = vld [vmem:[#allocation7 + $0x3c4] ss:$16 sps:$4 sm:$0xff]   ;;  %v2253_v5 = vld [vmem:[#allocation7 + $0x3c0] ss:$16 sps:$4 sm:$0xff]  }
  0x7c   :  { %1048 = vmatprep.subr.bf16.mxu1 %v2202_v35  ;;  %v2261_v6 = vld [vmem:[#allocation7 + $0x3e4] ss:$16 sps:$4 sm:$0xff]   ;;  %v2259_v7 = vld [vmem:[#allocation7 + $0x3e0] ss:$16 sps:$4 sm:$0xff]  }
  0x7d   :  { %1084 = vmatpush1.bf16.msra.mxu0 %v2199_v34  ;;  %v2354_v34 = vld [vmem:[#allocation8 + $0x4] ss:$8 sps:$4 sm:$0xff]   ;;  %v2373_v11 = vld [vmem:[#allocation8 + $0x70] ss:$8 sps:$4 sm:$0xff]  }
  0x7e   :  { %1085 = vmatprep.subr.bf16.mxu0 %v2207_v36  ;;  %v2256_v36 = vld [vmem:[#allocation7 + $0x28] ss:$16 sps:$4 sm:$0xff]  }
  0x7f   :  { %1049 = vmatpush1.bf16.msra.mxu1 %v2204_v37 }
  0x80   :  { %1050 = vmatprep.subr.bf16.mxu1 %v2208_v39  ;;  %v2264_v39 = vld [vmem:[#allocation7 + $0x4c] ss:$16 sps:$4 sm:$0xff]  }
  0x81   :  { %1086 = vmatpush1.bf16.msra.mxu0 %v2205_v38 }
  0x82   :  { %1087 = vmatprep.subr.bf16.mxu0 %v2213_v40 }
  0x83   :  { %1051 = vmatpush1.bf16.msra.mxu1 %v2210_v41 }
  0x84   :  { %1052 = vmatprep.subr.bf16.mxu1 %v2214_v43 }
  0x85   :  { %1088 = vmatpush1.bf16.msra.mxu0 %v2211_v42 }
  0x86   :  { %1089 = vmatprep.subr.bf16.mxu0 %v2219_v44  ;;  %v2262_v44 = vld [vmem:[#allocation7 + $0x48] ss:$16 sps:$4 sm:$0xff]  }
  0x87   :  { %1053 = vmatpush1.bf16.msra.mxu1 %v2216_v45  ;;  %v2352_v45 = vld [vmem:[#allocation8] ss:$8 sps:$4 sm:$0xff]  }
  0x88   :  { %1054 = vmatprep.subr.bf16.mxu1 %v2220_v47  ;;  %v2357_v47 = vld [vmem:[#allocation8 + $0x14] ss:$8 sps:$4 sm:$0xff]  }
  0x89   :  { %1090 = vmatpush1.bf16.msra.mxu0 %v2217_v46  ;;  %v2267_v46 = vld [vmem:[#allocation7 + $0x6c] ss:$16 sps:$4 sm:$0xff]  }
  0x8a   :  { %1091 = vmatprep.subr.bf16.mxu0 %v2225_v48  ;;  %v2265_v48 = vld [vmem:[#allocation7 + $0x68] ss:$16 sps:$4 sm:$0xff]  }
  0x8b   :  { %1055 = vmatpush1.bf16.msra.mxu1 %v2222_v49  ;;  %v2355_v49 = vld [vmem:[#allocation8 + $0x10] ss:$8 sps:$4 sm:$0xff]  }
  0x8c   :  { %1056 = vmatprep.subr.bf16.mxu1 %v2226_v51  ;;  %v2360_v51 = vld [vmem:[#allocation8 + $0x24] ss:$8 sps:$4 sm:$0xff]  }
  0x8d   :  { %1092 = vmatpush1.bf16.msra.mxu0 %v2223_v50  ;;  %v2270_v50 = vld [vmem:[#allocation7 + $0x8c] ss:$16 sps:$4 sm:$0xff]  }
  0x8e   :  { %1093 = vmatprep.subr.bf16.mxu0 %v2231_v52  ;;  %v2268_v52 = vld [vmem:[#allocation7 + $0x88] ss:$16 sps:$4 sm:$0xff]  }
  0x8f   :  { %1057 = vmatpush1.bf16.msra.mxu1 %v2228_v53  ;;  %v2358_v53 = vld [vmem:[#allocation8 + $0x20] ss:$8 sps:$4 sm:$0xff]  }
  0x90   :  { %1058 = vmatprep.subr.bf16.mxu1 %v2232_v55  ;;  %v2363_v55 = vld [vmem:[#allocation8 + $0x34] ss:$8 sps:$4 sm:$0xff]  }
  0x91   :  { %1094 = vmatpush1.bf16.msra.mxu0 %v2229_v54  ;;  %v2273_v54 = vld [vmem:[#allocation7 + $0xac] ss:$16 sps:$4 sm:$0xff]  }
  0x92   :  { %1095 = vmatprep.subr.bf16.mxu0 %v2237_v56  ;;  %v2271_v56 = vld [vmem:[#allocation7 + $0xa8] ss:$16 sps:$4 sm:$0xff]  }
  0x93   :  { %1059 = vmatpush1.bf16.msra.mxu1 %v2234_v57  ;;  %v2361_v57 = vld [vmem:[#allocation8 + $0x30] ss:$8 sps:$4 sm:$0xff]  }
  0x94   :  { %1060 = vmatprep.subr.bf16.mxu1 %v2238_v59  ;;  %v2366_v59 = vld [vmem:[#allocation8 + $0x44] ss:$8 sps:$4 sm:$0xff]  }
  0x95   :  { %1096 = vmatpush1.bf16.msra.mxu0 %v2235_v58  ;;  %v2276_v58 = vld [vmem:[#allocation7 + $0xcc] ss:$16 sps:$4 sm:$0xff]  }
  0x96   :  { %1097 = vmatprep.subr.bf16.mxu0 %v2243_v61  ;;  %v2364_v61 = vld [vmem:[#allocation8 + $0x40] ss:$8 sps:$4 sm:$0xff]  }
  0x97   :  { %1061 = vmatpush1.bf16.msra.mxu1 %v2240_v60  ;;  %v2274_v60 = vld [vmem:[#allocation7 + $0xc8] ss:$16 sps:$4 sm:$0xff]  }
  0x98   :  { %1062 = vmatprep.subr.bf16.mxu1 %v2244_v63  ;;  %v2369_v63 = vld [vmem:[#allocation8 + $0x54] ss:$8 sps:$4 sm:$0xff]  }
  0x99   :  { %1098 = vmatpush1.bf16.msra.mxu0 %v2241_v62  ;;  %v2279_v62 = vld [vmem:[#allocation7 + $0xec] ss:$16 sps:$4 sm:$0xff]  }
  0x9a   :  { %1099 = vmatprep.subr.bf16.mxu0 %v2249_v1  ;;  %v2367_v1 = vld [vmem:[#allocation8 + $0x50] ss:$8 sps:$4 sm:$0xff]  }
  0x9b   :  { %1063 = vmatpush1.bf16.msra.mxu1 %v2246_v0  ;;  %v2277_v0 = vld [vmem:[#allocation7 + $0xe8] ss:$16 sps:$4 sm:$0xff]  }
  0x9c   :  { %1114 = vmatprep.subr.bf16.mxu1 %v2252_v3  ;;  %v2372_v3 = vld [vmem:[#allocation8 + $0x64] ss:$8 sps:$4 sm:$0xff]  }
  0x9d   :  { %1100 = vmatpush1.bf16.msra.mxu0 %v2247_v2  ;;  %v2282_v2 = vld [vmem:[#allocation7 + $0x10c] ss:$16 sps:$4 sm:$0xff]  }
  0x9e   :  { %1101 = vmatprep.subr.bf16.mxu0 %v2255_v4  ;;  %v2280_v4 = vld [vmem:[#allocation7 + $0x108] ss:$16 sps:$4 sm:$0xff]  }
  0xa1   :  { %1102 = vmatpush1.bf16.msra.mxu0 %v2253_v5  ;;  %v2370_v5 = vld [vmem:[#allocation8 + $0x60] ss:$8 sps:$4 sm:$0xff]  }
  0xa2   :  { %1103 = vmatprep.subr.bf16.mxu0 %v2261_v6  ;;  %v2285_v6 = vld [vmem:[#allocation7 + $0x12c] ss:$16 sps:$4 sm:$0xff]  }
  0xa5   :  { %1104 = vmatpush1.bf16.msra.mxu0 %v2259_v7  ;;  %v2375_v7 = vld [vmem:[#allocation8 + $0x74] ss:$8 sps:$4 sm:$0xff]  }
  0xa6   :  { %1600 = vmatprep.subr.bf16.mxu0 %v2354_v34  ;;  %v2303_v34 = vld [vmem:[#allocation7 + $0x1ec] ss:$16 sps:$4 sm:$0xff]  }
 0x133   :  { %v186_v15 = vpop.f32.mrb[0].mxu0 }
 0x134   :  { %v187_v16 = vadd.f32 %v186_v15, %v111_v13  ;;  %v188_v17 = vpop.f32.mrb[1].mxu0  ;;  %v2288_v13 = vld [vmem:[#allocation7 + $0x14c] ss:$16 sps:$4 sm:$0xff]   ;;  %v2286_v15 = vld [vmem:[#allocation7 + $0x148] ss:$16 sps:$4 sm:$0xff]  }
 0x135   :  { %v189_v19 = vadd.f32 %v188_v17, %v115_v14  ;;  %v190_v20 = vpop.f32.mrb[2].mxu0  ;;  %v2378_v14 = vld [vmem:[#allocation8 + $0x84] ss:$8 sps:$4 sm:$0xff]  }
 0x136   :  { %v234_v22 = vmax.f32 %v187_v16, 0.0  ;;  %v191_v23 = vpop.f32.mrb[3].mxu0  ;;  %v2376_v16 = vld [vmem:[#allocation8 + $0x80] ss:$8 sps:$4 sm:$0xff]   ;;  %v2291_v17 = vld [vmem:[#allocation7 + $0x16c] ss:$16 sps:$4 sm:$0xff]  }
 0x137   :  { %v235_v24 = vmax.f32 %v189_v19, 0.0  ;;  %v2381_v19 = vld [vmem:[#allocation8 + $0x94] ss:$8 sps:$4 sm:$0xff]   ;;  %v2289_v20 = vld [vmem:[#allocation7 + $0x168] ss:$16 sps:$4 sm:$0xff]  }
 0x138   :  { %v2765_v29 = vpack.c.bf16 %v234_v22, %v234_v22  ;;  %v2379_v22 = vld [vmem:[#allocation8 + $0x90] ss:$8 sps:$4 sm:$0xff]   ;;  %v2294_v23 = vld [vmem:[#allocation7 + $0x18c] ss:$16 sps:$4 sm:$0xff]  }
 0x139   :  { %v239_v26 = vpack.c.bf16 %v235_v24, %v235_v24  ;;  %v2384_v24 = vld [vmem:[#allocation8 + $0xa4] ss:$8 sps:$4 sm:$0xff]  }
 0x13b   :  { %v227_v31 = vpop.f32.mrb[4].mxu0  ;;  %1064 = vmatprep.mubr.bf16.mxu1 %v239_v26 }
 0x13c   :  { %v228_v32 = vadd.f32 %v227_v31, %v119_v25  ;;  %v229_v33 = vpop.f32.mrb[5].mxu0  ;;  %1065 = vmatmul.mubr.bf16.vlgmr.msra.gmra.mrb[0].mxu1 %v2765_v29  ;;  %v2292_v25 = vld [vmem:[#allocation7 + $0x188] ss:$16 sps:$4 sm:$0xff]  }
 0x13d   :  { %v230_v35 = vadd.f32 %v229_v33, %v123_v28  ;;  %1115 = vmatpush1.bf16.msra.mxu1 %v2250_v27  ;;  %1146 = vmatprep.mubr.bf16.mxu1 %v239_v26  ;;  %v231_v37 = vpop.f32.mrb[6].mxu0  ;;  %v2382_v26 = vld [vmem:[#allocation8 + $0xa0] ss:$8 sps:$4 sm:$0xff]   ;;  %v2297_v27 = vld [vmem:[#allocation7 + $0x1ac] ss:$16 sps:$4 sm:$0xff]  }
 0x13e   :  { %v236_v38 = vmax.f32 %v228_v32, 0.0  ;;  %1116 = vmatprep.subr.bf16.mxu1 %v2258_v30  ;;  %v232_v40 = vpop.f32.mrb[7].mxu0  ;;  %v2387_v28 = vld [vmem:[#allocation8 + $0xb4] ss:$8 sps:$4 sm:$0xff]   ;;  %v2295_v30 = vld [vmem:[#allocation7 + $0x1a8] ss:$16 sps:$4 sm:$0xff]  }
 0x13f   :  { %v237_v41 = vmax.f32 %v230_v35, 0.0  ;;  %v2385_v31 = vld [vmem:[#allocation8 + $0xb0] ss:$8 sps:$4 sm:$0xff]   ;;  %v2300_v32 = vld [vmem:[#allocation7 + $0x1cc] ss:$16 sps:$4 sm:$0xff]  }
 0x140   :  { %v2768_v42 = vpack.c.bf16 %v236_v38, %v236_v38  ;;  %v2298_v33 = vld [vmem:[#allocation7 + $0x1c8] ss:$16 sps:$4 sm:$0xff]   ;;  %v2309_v38 = vld [vmem:[#allocation7 + $0x22c] ss:$16 sps:$4 sm:$0xff]  }
 0x141   :  { %v2770_v43 = vpack.c.bf16 %v237_v41, %v237_v41  ;;  %1117 = vmatpush1.bf16.msra.mxu1 %v2256_v36  ;;  %v2301_v35 = vld [vmem:[#allocation7 + $0x1e8] ss:$16 sps:$4 sm:$0xff]   ;;  %v2306_v36 = vld [vmem:[#allocation7 + $0x20c] ss:$16 sps:$4 sm:$0xff]  }
 0x142   :  { %1118 = vmatprep.subr.bf16.mxu1 %v2264_v39  ;;  %v2304_v37 = vld [vmem:[#allocation7 + $0x208] ss:$16 sps:$4 sm:$0xff]   ;;  %v2312_v40 = vld [vmem:[#allocation7 + $0x24c] ss:$16 sps:$4 sm:$0xff]  }
 0x143   :  { %1105 = vmatprep.mubr.bf16.mxu0 %v2770_v43  ;;  %v2307_v39 = vld [vmem:[#allocation7 + $0x228] ss:$16 sps:$4 sm:$0xff]  }
 0x144   :  { %1106 = vmatmul.mubr.bf16.vlgmr.msra.gmra.mrb[8].mxu0 %v2768_v42  ;;  %v2310_v41 = vld [vmem:[#allocation7 + $0x248] ss:$16 sps:$4 sm:$0xff]  }
 0x145   :  { %1119 = vmatpush1.bf16.msra.mxu1 %v2262_v44  ;;  %1601 = vmatpush1.bf16.msra.mxu0 %v2352_v45  ;;  %v2315_v44 = vld [vmem:[#allocation7 + $0x26c] ss:$16 sps:$4 sm:$0xff]   ;;  %v2313_v45 = vld [vmem:[#allocation7 + $0x268] ss:$16 sps:$4 sm:$0xff]  }
 0x146   :  { %1120 = vmatprep.subr.bf16.mxu1 %v2267_v46  ;;  %1602 = vmatprep.subr.bf16.mxu0 %v2357_v47  ;;  %v2318_v46 = vld [vmem:[#allocation7 + $0x28c] ss:$16 sps:$4 sm:$0xff]   ;;  %v2316_v47 = vld [vmem:[#allocation7 + $0x288] ss:$16 sps:$4 sm:$0xff]  }
 0x149   :  { %1121 = vmatpush1.bf16.msra.mxu1 %v2265_v48  ;;  %1603 = vmatpush1.bf16.msra.mxu0 %v2355_v49  ;;  %v2321_v48 = vld [vmem:[#allocation7 + $0x2ac] ss:$16 sps:$4 sm:$0xff]  }
 0x14a   :  { %1122 = vmatprep.subr.bf16.mxu1 %v2270_v50  ;;  %1604 = vmatprep.subr.bf16.mxu0 %v2360_v51  ;;  %v2324_v49 = vld [vmem:[#allocation7 + $0x2cc] ss:$16 sps:$4 sm:$0xff]   ;;  %v2388_v50 = vld [vmem:[#allocation8 + $0xc0] ss:$8 sps:$4 sm:$0xff]  }
 0x14b   :  { %v2322_v51 = vld [vmem:[#allocation7 + $0x2c8] ss:$16 sps:$4 sm:$0xff]  }
 0x14d   :  { %1123 = vmatpush1.bf16.msra.mxu1 %v2268_v52  ;;  %1605 = vmatpush1.bf16.msra.mxu0 %v2358_v53  ;;  %v2327_v52 = vld [vmem:[#allocation7 + $0x2ec] ss:$16 sps:$4 sm:$0xff]   ;;  %v2391_v53 = vld [vmem:[#allocation8 + $0xd0] ss:$8 sps:$4 sm:$0xff]  }
 0x14e   :  { %1124 = vmatprep.subr.bf16.mxu1 %v2273_v54  ;;  %1606 = vmatprep.subr.bf16.mxu0 %v2363_v55  ;;  %v2393_v54 = vld [vmem:[#allocation8 + $0xd4] ss:$8 sps:$4 sm:$0xff]   ;;  %v2325_v55 = vld [vmem:[#allocation7 + $0x2e8] ss:$16 sps:$4 sm:$0xff]  }
 0x151   :  { %1125 = vmatpush1.bf16.msra.mxu1 %v2271_v56  ;;  %1607 = vmatpush1.bf16.msra.mxu0 %v2361_v57  ;;  %v2330_v56 = vld [vmem:[#allocation7 + $0x30c] ss:$16 sps:$4 sm:$0xff]  }
 0x152   :  { %1126 = vmatprep.subr.bf16.mxu1 %v2276_v58  ;;  %1608 = vmatprep.subr.bf16.mxu0 %v2366_v59  ;;  %v2396_v57 = vld [vmem:[#allocation8 + $0xe4] ss:$8 sps:$4 sm:$0xff]   ;;  %v2394_v58 = vld [vmem:[#allocation8 + $0xe0] ss:$8 sps:$4 sm:$0xff]  }
 0x153   :  { %v2328_v59 = vld [vmem:[#allocation7 + $0x308] ss:$16 sps:$4 sm:$0xff]  }
 0x155   :  { %1127 = vmatpush1.bf16.msra.mxu1 %v2274_v60  ;;  %1609 = vmatpush1.bf16.msra.mxu0 %v2364_v61  ;;  %v2333_v60 = vld [vmem:[#allocation7 + $0x32c] ss:$16 sps:$4 sm:$0xff]  }
 0x156   :  { %1128 = vmatprep.subr.bf16.mxu1 %v2279_v62  ;;  %1610 = vmatprep.subr.bf16.mxu0 %v2369_v63  ;;  %v2399_v61 = vld [vmem:[#allocation8 + $0xf4] ss:$8 sps:$4 sm:$0xff]   ;;  %v2397_v62 = vld [vmem:[#allocation8 + $0xf0] ss:$8 sps:$4 sm:$0xff]  }
 0x157   :  { %v2331_v63 = vld [vmem:[#allocation7 + $0x328] ss:$16 sps:$4 sm:$0xff]  }
 0x159   :  { %1129 = vmatpush1.bf16.msra.mxu1 %v2277_v0  ;;  %1611 = vmatpush1.bf16.msra.mxu0 %v2367_v1  ;;  %v2336_v0 = vld [vmem:[#allocation7 + $0x34c] ss:$16 sps:$4 sm:$0xff]  }
 0x15a   :  { %1130 = vmatprep.subr.bf16.mxu1 %v2282_v2  ;;  %1612 = vmatprep.subr.bf16.mxu0 %v2372_v3  ;;  %v2402_v1 = vld [vmem:[#allocation8 + $0x104] ss:$8 sps:$4 sm:$0xff]   ;;  %v2334_v2 = vld [vmem:[#allocation7 + $0x348] ss:$16 sps:$4 sm:$0xff]  }
 0x15b   :  { %v2339_v3 = vld [vmem:[#allocation7 + $0x36c] ss:$16 sps:$4 sm:$0xff]  }
 0x15d   :  { %1131 = vmatpush1.bf16.msra.mxu1 %v2280_v4  ;;  %1613 = vmatpush1.bf16.msra.mxu0 %v2370_v5  ;;  %v2337_v4 = vld [vmem:[#allocation7 + $0x368] ss:$16 sps:$4 sm:$0xff]   ;;  %v2342_v5 = vld [vmem:[#allocation7 + $0x38c] ss:$16 sps:$4 sm:$0xff]  }
 0x15e   :  { %1132 = vmatprep.subr.bf16.mxu1 %v2285_v6  ;;  %1614 = vmatprep.subr.bf16.mxu0 %v2375_v7  ;;  %v2340_v6 = vld [vmem:[#allocation7 + $0x388] ss:$16 sps:$4 sm:$0xff]   ;;  %v2345_v7 = vld [vmem:[#allocation7 + $0x3ac] ss:$16 sps:$4 sm:$0xff]  }
 0x161   :  { %1133 = vmatpush1.bf16.msra.mxu1 %v2283_v8  ;;  %1615 = vmatpush1.bf16.msra.mxu0 %v2373_v11  ;;  %v2343_v8 = vld [vmem:[#allocation7 + $0x3a8] ss:$16 sps:$4 sm:$0xff]   ;;  %v2348_v11 = vld [vmem:[#allocation7 + $0x3cc] ss:$16 sps:$4 sm:$0xff]  }
 0x162   :  { %1134 = vmatprep.subr.bf16.mxu1 %v2288_v13  ;;  %1616 = vmatprep.subr.bf16.mxu0 %v2378_v14  ;;  %v2346_v13 = vld [vmem:[#allocation7 + $0x3c8] ss:$16 sps:$4 sm:$0xff]   ;;  %v2351_v14 = vld [vmem:[#allocation7 + $0x3ec] ss:$16 sps:$4 sm:$0xff]  }
 0x165   :  { %1135 = vmatpush1.bf16.msra.mxu1 %v2286_v15  ;;  %1617 = vmatpush1.bf16.msra.mxu0 %v2376_v16  ;;  %v2349_v15 = vld [vmem:[#allocation7 + $0x3e8] ss:$16 sps:$4 sm:$0xff]  }
 0x166   :  { %1136 = vmatprep.subr.bf16.mxu1 %v2291_v17  ;;  %1618 = vmatprep.subr.bf16.mxu0 %v2381_v19  ;;  %v2780_v16 = vld [vmem:[%s2816_s4] sm:$0xf] }
 0x169   :  { %1137 = vmatpush1.bf16.msra.mxu1 %v2289_v20  ;;  %1619 = vmatpush1.bf16.msra.mxu0 %v2379_v22  ;;  %v375_v22 = vrot.slane %v2780_v16, %v2749_v10 }
 0x16a   :  { %1138 = vmatprep.subr.bf16.mxu1 %v2294_v23  ;;  %1620 = vmatprep.subr.bf16.mxu0 %v2384_v24  ;;  %v379_v24 = vrot.slane %v2780_v16, %v2755_v12 }
 0x16d   :  { %1139 = vmatpush1.bf16.msra.mxu1 %v2292_v25  ;;  %1621 = vmatpush1.bf16.msra.mxu0 %v2382_v26 }
 0x16e   :  { %1140 = vmatprep.subr.bf16.mxu1 %v2297_v27  ;;  %1622 = vmatprep.subr.bf16.mxu0 %v2387_v28 }
 0x171   :  { %1141 = vmatpush1.bf16.msra.mxu1 %v2295_v30  ;;  %1623 = vmatpush1.bf16.msra.mxu0 %v2385_v31  ;;  %v2448_v30 = vld [vmem:[#allocation10 + $0x40] sm:$0xff]  }
 0x172   :  { %1142 = vmatprep.subr.bf16.mxu1 %v2300_v32  ;;  %v2449_v31 = vld [vmem:[#allocation10] sm:$0xff]   ;;  %v2450_v32 = vld [vmem:[#allocation10 + $0x48] sm:$0xff]  }
 0x175   :  { %1143 = vmatpush1.bf16.msra.mxu1 %v2298_v33 }
 0x176   :  { %1144 = vmatprep.subr.bf16.mxu1 %v2303_v34 }
 0x179   :  { %1145 = vmatpush1.bf16.msra.mxu1 %v2301_v35 }
 0x17a   :  { %1155 = vmatprep.subr.bf16.mxu1 %v2306_v36 }
 0x17c   :  { %1147 = vmatmul.mubr.bf16.vlgmr.msra.gmra.mrb[4].mxu1 %v2765_v29  ;;  %v2319_v29 = vld [vmem:[#allocation7 + $0x2a8] ss:$16 sps:$4 sm:$0xff]  }
 0x17d   :  { %1156 = vmatpush1.bf16.msra.mxu1 %v2304_v37  ;;  %1187 = vmatprep.mubr.bf16.mxu1 %v2770_v43  ;;  %v2390_v43 = vld [vmem:[#allocation8 + $0xc4] ss:$8 sps:$4 sm:$0xff]  }
 0x17e   :  { %1157 = vmatprep.subr.bf16.mxu1 %v2309_v38  ;;  %1624 = vmatprep.subr.bf16.mxu0 %v2390_v43  ;;  %v2451_v38 = vld [vmem:[#allocation10 + $0x8] sm:$0xff]   ;;  %v2456_v43 = vld [vmem:[#allocation10 + $0x60] sm:$0xff]  }
 0x17f   :  { %1625 = vmatpush1.bf16.msra.mxu0 %v2388_v50  ;;  %v2406_v50 = vld [vmem:[#allocation8 + $0x120] ss:$8 sps:$4 sm:$0xff]  }
 0x180   :  { %1626 = vmatprep.subr.bf16.mxu0 %v2393_v54  ;;  %v2409_v54 = vld [vmem:[#allocation8 + $0x130] ss:$8 sps:$4 sm:$0xff]  }
 0x181   :  { %1158 = vmatpush1.bf16.msra.mxu1 %v2307_v39  ;;  %v2452_v39 = vld [vmem:[#allocation10 + $0x50] sm:$0xff]  }
 0x182   :  { %1159 = vmatprep.subr.bf16.mxu1 %v2312_v40 }
 0x183   :  { %1627 = vmatpush1.bf16.msra.mxu0 %v2391_v53  ;;  %v2458_v53 = vld [vmem:[#allocation10 + $0x68] sm:$0xff]  }
 0x184   :  { %1628 = vmatprep.subr.bf16.mxu0 %v2396_v57  ;;  %v2412_v57 = vld [vmem:[#allocation8 + $0x140] ss:$8 sps:$4 sm:$0xff]  }
 0x185   :  { %1160 = vmatpush1.bf16.msra.mxu1 %v2310_v41  ;;  %v2400_v41 = vld [vmem:[#allocation8 + $0x100] ss:$8 sps:$4 sm:$0xff]  }
 0x186   :  { %1161 = vmatprep.subr.bf16.mxu1 %v2315_v44 }
 0x187   :  { %1629 = vmatpush1.bf16.msra.mxu0 %v2394_v58  ;;  %v2417_v58 = vld [vmem:[#allocation8 + $0x154] ss:$8 sps:$4 sm:$0xff]  }
 0x188   :  { %1630 = vmatprep.subr.bf16.mxu0 %v2399_v61  ;;  %v2418_v61 = vld [vmem:[#allocation8 + $0x160] ss:$8 sps:$4 sm:$0xff]  }
 0x189   :  { %1162 = vmatpush1.bf16.msra.mxu1 %v2313_v45  ;;  %v2405_v45 = vld [vmem:[#allocation8 + $0x114] ss:$8 sps:$4 sm:$0xff]  }
 0x18a   :  { %1163 = vmatprep.subr.bf16.mxu1 %v2318_v46  ;;  %v2453_v46 = vld [vmem:[#allocation10 + $0x10] sm:$0xff]  }
 0x18b   :  { %1631 = vmatpush1.bf16.msra.mxu0 %v2397_v62  ;;  %v2423_v62 = vld [vmem:[#allocation8 + $0x174] ss:$8 sps:$4 sm:$0xff]  }
 0x18c   :  { %1641 = vmatprep.subr.bf16.mxu0 %v2402_v1  ;;  %v2424_v1 = vld [vmem:[#allocation8 + $0x180] ss:$8 sps:$4 sm:$0xff]  }
 0x18d   :  { %1164 = vmatpush1.bf16.msra.mxu1 %v2316_v47  ;;  %v2454_v47 = vld [vmem:[#allocation10 + $0x58] sm:$0xff]  }
 0x18e   :  { %1165 = vmatprep.subr.bf16.mxu1 %v2321_v48  ;;  %v2403_v48 = vld [vmem:[#allocation8 + $0x110] ss:$8 sps:$4 sm:$0xff]  }
 0x191   :  { %1166 = vmatpush1.bf16.msra.mxu1 %v2319_v29  ;;  %v2408_v29 = vld [vmem:[#allocation8 + $0x124] ss:$8 sps:$4 sm:$0xff]  }
 0x192   :  { %1167 = vmatprep.subr.bf16.mxu1 %v2324_v49  ;;  %v2455_v49 = vld [vmem:[#allocation10 + $0x18] sm:$0xff]  }
 0x195   :  { %1168 = vmatpush1.bf16.msra.mxu1 %v2322_v51  ;;  %v2411_v51 = vld [vmem:[#allocation8 + $0x134] ss:$8 sps:$4 sm:$0xff]  }
 0x196   :  { %1169 = vmatprep.subr.bf16.mxu1 %v2327_v52  ;;  %v2457_v52 = vld [vmem:[#allocation10 + $0x20] sm:$0xff]  }
 0x199   :  { %1170 = vmatpush1.bf16.msra.mxu1 %v2325_v55  ;;  %v2414_v55 = vld [vmem:[#allocation8 + $0x144] ss:$8 sps:$4 sm:$0xff]  }
 0x19a   :  { %1171 = vmatprep.subr.bf16.mxu1 %v2330_v56  ;;  %v2459_v56 = vld [vmem:[#allocation10 + $0x28] sm:$0xff]  }
 0x19d   :  { %1172 = vmatpush1.bf16.msra.mxu1 %v2328_v59  ;;  %v2415_v59 = vld [vmem:[#allocation8 + $0x150] ss:$8 sps:$4 sm:$0xff]  }
 0x19e   :  { %1173 = vmatprep.subr.bf16.mxu1 %v2333_v60  ;;  %v2420_v60 = vld [vmem:[#allocation8 + $0x164] ss:$8 sps:$4 sm:$0xff]  }
 0x1a1   :  { %1174 = vmatpush1.bf16.msra.mxu1 %v2331_v63  ;;  %v2421_v63 = vld [vmem:[#allocation8 + $0x170] ss:$8 sps:$4 sm:$0xff]  }
 0x1a2   :  { %1175 = vmatprep.subr.bf16.mxu1 %v2336_v0  ;;  %v2426_v0 = vld [vmem:[#allocation8 + $0x184] ss:$8 sps:$4 sm:$0xff]  }
 0x1a5   :  { %1176 = vmatpush1.bf16.msra.mxu1 %v2334_v2  ;;  %v2429_v2 = vld [vmem:[#allocation8 + $0x194] ss:$8 sps:$4 sm:$0xff]  }
 0x1a6   :  { %1177 = vmatprep.subr.bf16.mxu1 %v2339_v3  ;;  %v2427_v3 = vld [vmem:[#allocation8 + $0x190] ss:$8 sps:$4 sm:$0xff]  }
 0x1a9   :  { %1178 = vmatpush1.bf16.msra.mxu1 %v2337_v4  ;;  %v2432_v4 = vld [vmem:[#allocation8 + $0x1a4] ss:$8 sps:$4 sm:$0xff]  }
 0x1aa   :  { %1179 = vmatprep.subr.bf16.mxu1 %v2342_v5  ;;  %v2430_v5 = vld [vmem:[#allocation8 + $0x1a0] ss:$8 sps:$4 sm:$0xff]  }
 0x1ad   :  { %1180 = vmatpush1.bf16.msra.mxu1 %v2340_v6  ;;  %v2435_v6 = vld [vmem:[#allocation8 + $0x1b4] ss:$8 sps:$4 sm:$0xff]  }
 0x1ae   :  { %1181 = vmatprep.subr.bf16.mxu1 %v2345_v7  ;;  %v2433_v7 = vld [vmem:[#allocation8 + $0x1b0] ss:$8 sps:$4 sm:$0xff]  }
 0x1b1   :  { %1182 = vmatpush1.bf16.msra.mxu1 %v2343_v8  ;;  %v2438_v8 = vld [vmem:[#allocation8 + $0x1c4] ss:$8 sps:$4 sm:$0xff]  }
 0x1b2   :  { %1183 = vmatprep.subr.bf16.mxu1 %v2348_v11  ;;  %v2436_v11 = vld [vmem:[#allocation8 + $0x1c0] ss:$8 sps:$4 sm:$0xff]  }
 0x1b5   :  { %1184 = vmatpush1.bf16.msra.mxu1 %v2346_v13  ;;  %v2441_v13 = vld [vmem:[#allocation8 + $0x1d4] ss:$8 sps:$4 sm:$0xff]  }
 0x1b6   :  { %1185 = vmatprep.subr.bf16.mxu1 %v2351_v14  ;;  %v2439_v14 = vld [vmem:[#allocation8 + $0x1d0] ss:$8 sps:$4 sm:$0xff]  }
 0x1b9   :  { %1186 = vmatpush1.bf16.msra.mxu1 %v2349_v15  ;;  %v2444_v15 = vld [vmem:[#allocation8 + $0x1e4] ss:$8 sps:$4 sm:$0xff]  }
 0x1ba   :  { %2103 = vmatprep.subr.bf16.mxu1 %v2448_v30 }
 0x1bc   :  { %1188 = vmatmul.mubr.bf16.vlgmr.msra.gmra.mrb[4].mxu1 %v2768_v42 }
 0x1bd   :  { %2104 = vmatpush3.bf16.msra.mxu1 %v2449_v31 }
 0x1be   :  { %2105 = vmatprep.subr.bf16.mxu1 %v2450_v32 }
 0x1c1   :  { %2106 = vmatpush3.bf16.msra.mxu1 %v2451_v38 }
 0x1c2   :  { %2107 = vmatprep.subr.bf16.mxu1 %v2452_v39 }
 0x1c5   :  { %2108 = vmatpush3.bf16.msra.mxu1 %v2453_v46 }
 0x1c6   :  { %2109 = vmatprep.subr.bf16.mxu1 %v2454_v47 }
 0x1c9   :  { %2110 = vmatpush3.bf16.msra.mxu1 %v2455_v49 }
 0x1ca   :  { %2111 = vmatprep.subr.bf16.mxu1 %v2456_v43 }
 0x1cd   :  { %2112 = vmatpush3.bf16.msra.mxu1 %v2457_v52 }
 0x1ce   :  { %2113 = vmatprep.subr.bf16.mxu1 %v2458_v53 }
 0x1d1   :  { %2114 = vmatpush3.bf16.msra.mxu1 %v2459_v56 }
 0x20f   :  { %v1066_v17 = vpop.f32.mrb[0].mxu1 }
 0x210   :  { %v1068_v19 = vpop.f32.mrb[1].mxu1  ;;  %v1067_v25 = vadd.f32 %v1066_v17, %v375_v22  ;;  %v2442_v17 = vld [vmem:[#allocation8 + $0x1e0] ss:$8 sps:$4 sm:$0xff]   ;;  %v383_v22 = vrot.slane %v2780_v16, %v118_v18  ;;  %v2462_v18 = vld [vmem:[#allocation10 + $0x78] sm:$0xff]  }
 0x211   :  { %v1070_v20 = vpop.f32.mrb[2].mxu1  ;;  %v1069_v26 = vadd.f32 %v1068_v19, %v379_v24  ;;  %v2447_v19 = vld [vmem:[#allocation8 + $0x1f4] ss:$8 sps:$4 sm:$0xff]  }
 0x212   :  { %v1071_v23 = vpop.f32.mrb[3].mxu1  ;;  %v2445_v20 = vld [vmem:[#allocation8 + $0x1f0] ss:$8 sps:$4 sm:$0xff]  }
 0x213   :  { %v387_v23 = vrot.slane %v2780_v16, %v122_v21  ;;  %v1268_v21 = vld [vmem:[%s2818_s6] sm:$0x3] }
 0x214   :  { %v1273_v16 = vrot.slane %v1268_v21, %v2749_v10  ;;  %v2086_v10 = vld [vmem:[%s2820_s8] ss:$0 sm:$0xff]  ;;  %s2578_s8 = scalar_lea.vmem %s1878_s10, 128 }
 0x215   :  { %p2579_p12 = scmp.ne.s32.totalorder %s1878_s10, %s2578_s8  ;;  %p2584_p0 = scmp.lt.s32.totalorder %s2578_s8, %s2578_s8 }
 0x217   :  { %v1107_v27 = vpop.f32.mrb[8].mxu0  ;;  %p2585_p1 = por %p2584_p0, %p2583_p13 }
 0x218   :  { %v1108_v28 = vadd.f32 %v1107_v27, %v1067_v25  ;;  %v1109_v42 = vpop.f32.mrb[9].mxu0 }
 0x219   :  { %v1110_v33 = vadd.f32 %v1109_v42, %v1069_v26  ;;  %v1111_v34 = vpop.f32.mrb[10].mxu0  ;;  %p2586_p2 = pnand %p2585_p1, %p2579_p12 }
 0x21a   :  { %v1196_v35 = vmax.f32 %v1108_v28, 0.0  ;;  %v1112_v36 = vpop.f32.mrb[11].mxu0  ;;  %v2460_v34 = vld [vmem:[#allocation10 + $0x70] sm:$0xff]  }
 0x21b   :  { %v1197_v37 = vmax.f32 %v1110_v33, 0.0  ;;  %2115 = vmatprep.subr.bf16.mxu1 %v2460_v34  ;;  %v1277_v36 = vrot.slane %v1268_v21, %v2755_v12 }
 0x21c   :  { %v1200_v44 = vpack.c.bf16 %v1196_v35, %v1196_v35  ;;  %v2461_v35 = vld [vmem:[#allocation10 + $0x30] sm:$0xff]  }
 0x21d   :  { %v1201_v40 = vpack.c.bf16 %v1197_v37, %v1197_v37  ;;  %2116 = vmatpush3.bf16.msra.mxu1 %v2461_v35 }
 0x21e   :  { %2117 = vmatprep.subr.bf16.mxu1 %v2462_v18 }
 0x21f   :  { %1632 = vmatprep.mubr.bf16.mxu0 %v1201_v40 }
 0x220   :  { %1633 = vmatmul.mubr.bf16.vlgmr.msra.gmra.mrb[12].mxu0 %v1200_v44 }
 0x221   :  { %1642 = vmatpush1.bf16.msra.mxu0 %v2400_v41  ;;  %2118 = vmatpush3.bf16.msra.mxu1 %v2463_v9 }
 0x222   :  { %1643 = vmatprep.subr.bf16.mxu0 %v2405_v45 }
 0x225   :  { %1644 = vmatpush1.bf16.msra.mxu0 %v2403_v48 }
 0x226   :  { %1645 = vmatprep.subr.bf16.mxu0 %v2408_v29 }
 0x229   :  { %1646 = vmatpush1.bf16.msra.mxu0 %v2406_v50 }
 0x22a   :  { %1647 = vmatprep.subr.bf16.mxu0 %v2411_v51 }
 0x22d   :  { %1648 = vmatpush1.bf16.msra.mxu0 %v2409_v54 }
 0x22e   :  { %1649 = vmatprep.subr.bf16.mxu0 %v2414_v55 }
 0x231   :  { %1650 = vmatpush1.bf16.msra.mxu0 %v2412_v57 }
 0x232   :  { %1651 = vmatprep.subr.bf16.mxu0 %v2417_v58 }
 0x235   :  { %1652 = vmatpush1.bf16.msra.mxu0 %v2415_v59 }
 0x236   :  { %1653 = vmatprep.subr.bf16.mxu0 %v2420_v60 }
 0x239   :  { %1654 = vmatpush1.bf16.msra.mxu0 %v2418_v61 }
 0x23a   :  { %1655 = vmatprep.subr.bf16.mxu0 %v2423_v62 }
 0x23d   :  { %1656 = vmatpush1.bf16.msra.mxu0 %v2421_v63 }
 0x23e   :  { %1657 = vmatprep.subr.bf16.mxu0 %v2426_v0 }
 0x241   :  { %1658 = vmatpush1.bf16.msra.mxu0 %v2424_v1 }
 0x242   :  { %1659 = vmatprep.subr.bf16.mxu0 %v2429_v2 }
 0x245   :  { %1660 = vmatpush1.bf16.msra.mxu0 %v2427_v3 }
 0x246   :  { %1661 = vmatprep.subr.bf16.mxu0 %v2432_v4 }
 0x249   :  { %1662 = vmatpush1.bf16.msra.mxu0 %v2430_v5 }
 0x24a   :  { %1663 = vmatprep.subr.bf16.mxu0 %v2435_v6 }
 0x24d   :  { %1664 = vmatpush1.bf16.msra.mxu0 %v2433_v7 }
 0x24e   :  { %1665 = vmatprep.subr.bf16.mxu0 %v2438_v8 }
 0x251   :  { %1666 = vmatpush1.bf16.msra.mxu0 %v2436_v11 }
 0x252   :  { %1667 = vmatprep.subr.bf16.mxu0 %v2441_v13 }
 0x255   :  { %1668 = vmatpush1.bf16.msra.mxu0 %v2439_v14 }
 0x256   :  { %1669 = vmatprep.subr.bf16.mxu0 %v2444_v15 }
 0x259   :  { %1670 = vmatpush1.bf16.msra.mxu0 %v2442_v17 }
 0x25a   :  { %1671 = vmatprep.subr.bf16.mxu0 %v2447_v19 }
 0x25d   :  { %1672 = vmatpush1.bf16.msra.mxu0 %v2445_v20 }
 0x28f   :  { %v1189_v24 = vpop.f32.mrb[4].mxu1 }
 0x290   :  { %v2129_v25 = vadd.f32 %v1189_v24, %v383_v22  ;;  %v1191_v26 = vpop.f32.mrb[5].mxu1 }
 0x291   :  { %v2130_v27 = vadd.f32 %v1191_v26, %v387_v23  ;;  %v1193_v28 = vpop.f32.mrb[6].mxu1 }
 0x292   :  { %v1198_v42 = vmax.f32 %v2129_v25, 0.0  ;;  %v1194_v30 = vpop.f32.mrb[7].mxu1 }
 0x293   :  { %v1199_v31 = vmax.f32 %v2130_v27, 0.0 }
 0x294   :  { %v1202_v33 = vpack.c.bf16 %v1198_v42, %v1198_v42 }
 0x295   :  { %v1203_v32 = vpack.c.bf16 %v1199_v31, %v1199_v31 }
 0x297   :  { %1673 = vmatprep.mubr.bf16.mxu0 %v1203_v32 }
 0x298   :  { %1674 = vmatmul.mubr.bf16.vlgmr.msra.gmra.mrb[12].mxu0 %v1202_v33 }
 0x36b   :  { %v1675_v37 = vpop.f32.mrb[12].mxu0 }
 0x36c   :  { %v2131_v38 = vadd.f32 %v1675_v37, %v1273_v16  ;;  %v1677_v39 = vpop.f32.mrb[13].mxu0 }
 0x36d   :  { %v2132_v40 = vadd.f32 %v1677_v39, %v1277_v36  ;;  %v1679_v41 = vpop.f32.mrb[14].mxu0 }
 0x36e   :  { %v1682_v44 = vmax.f32 %v2131_v38, 0.0  ;;  %v1680_v45 = vpop.f32.mrb[15].mxu0 }
 0x36f   :  { %v1683_v46 = vmax.f32 %v2132_v40, 0.0 }
 0x370   :  { %v1684_v48 = vpack.c.bf16 %v1682_v44, %v1682_v44 }
 0x371   :  { %v1685_v47 = vpack.c.bf16 %v1683_v46, %v1683_v46 }
 0x373   :  { %1853 = vmatprep.mubr.bf16.mxu1 %v1685_v47 }
 0x374   :  { %1854 = vmatmul.mubr.bf16.vlgmr.msra.gmra.mrb[8].mxu1 %v1684_v48 }
 0x447   :  { %v2119_v29 = vpop.f32.mrb[8].mxu1 }
 0x448   :  { %v2120_v49 = vpop.f32.mrb[9].mxu1 }
 0x449   :  { %v2121_v43 = vadd.f32 %v2120_v49, %v2119_v29  ;;  %v2122_v12 = vpop.f32.mrb[10].mxu1 }
 0x44a   :  { %v2123_v50 = vpop.f32.mrb[11].mxu1 }
 0x44b   :  { %v1856_v51 = vadd.f32 %v2121_v43, %v2086_v10 }
 0x44d   :  { %1861 = vmax.xlane.f32.xlu0 %v1856_v51 }
 0x4da   :  { %v1862_v52 = vpop.xlane.xlu0 %1861 }
 0x4db   :  { %v1863_v53 = vsub.f32 %v1856_v51, %v1862_v52 }
 0x4dd   :  { %v1864_v54 = vmul.f32 1.442695, %v1863_v53 }
 0x4df   :  { %2464 = vpow2.f32 %v1864_v54 }
 0x4e9   :  { %v2465_v55 = vpop.eup %2464 }
 0x4ea   :  { %1866 = vadd.xlane.f32.xlu0 %v2465_v55 }
 0x577   :  { %v1867_v56 = vpop.xlane.xlu0 %1866 }
 0x578   :  { %2466 = vrcp.f32 %v1867_v56 }
 0x582   :  { %v2467_v57 = vpop.eup %2466 }
 0x583   :  { %v1869_v58 = vmul.f32 %v2467_v57, %v2465_v55 }
 0x585   :  { %1870 = vst [vmem:[#allocation11] sm:$0xff] %v1869_v58 }
 0x586   :  { %2589 = shalt.err (!%p2586_p2)
}
 0x587   :  { %s2590_s15 = scalar_lea.hbm %s2821_s9, 128 }
 0x588   :  { %p2591_p3 = scmp.ne.s32.totalorder %s2821_s9, %s2590_s15  ;;  %p2594_p4 = scmp.lt.u32.totalorder %s2590_s15, %s2821_s9 }
 0x58a   :  { %p2596_p5 = pnand %p2594_p4, %p2591_p3 }
 0x58c   :  { %2599 = shalt.err (!%p2596_p5)
}
 0x58d   :  { %1880 = dma.vmem_to_hbm [thread:$0]  %s1878_s10, 128, %s2821_s9, [#allocation4]  }
 0x58e   :  { %2606 = dma.done.wait [#allocation4], 128  }
 0x58f   :  { %2607 = vsyncadd [#allocation4], 4294967168 }
 0x590   :  { %1884 = vsyncpa [#allocation3], 1 }
 0x591   :  { %1885 = vsyncpa [#allocation6], 1 }
 0x592   :  { %1886 = vsyncpa [#allocation9], 1 }
 0x593   :  { %1887 = vsyncpa [#allocation4], 1 }

</bundles_post_ra>
